<compile_context>
chip_gen: v7x
topology: tpu7x:2x2x1
jax: 0.10.0
libtpu: 0.0.40
codegen_flags: <defaults>
</compile_context>

<pallas_src>
import jax
import jax.numpy as jnp
from jax.experimental import pallas as pl
from jax.experimental.pallas import tpu as pltpu

EPS = 1e-5  # PyTorch BatchNorm2d default eps


# --------------------------- Pallas kernels ---------------------------------

def _conv_relu_kernel(p_ref, w_ref, o_ref):
    # p_ref: (9*Cin, H*W) bf16 im2col patches (one sample)
    # w_ref: (Cout, 9*Cin) bf16
    # o_ref: (Cout, H*W)  -> relu(W @ P), lane-dense output (lane = H*W)
    acc = jnp.dot(w_ref[...], p_ref[...], preferred_element_type=jnp.float32)
    o_ref[...] = jnp.maximum(acc, 0.0).astype(o_ref.dtype)


def _conv2_fc_kernel(p_ref, w2_ref, fcw_ref, fcb_ref, o_ref):
    # Fused conv2 (stride-2, as K=9*Cin matmul) + ReLU + fc head, one sample.
    # p_ref: (9*Cin, Ho*Wo) bf16; w2_ref: (2C, 9*Cin) bf16
    # fcw_ref: (2C*Ho*Wo, 4) bf16; fcb_ref: (1, 4) f32; o_ref: (1, 4) f32
    h2 = jnp.maximum(
        jnp.dot(w2_ref[...], p_ref[...], preferred_element_type=jnp.float32),
        0.0)
    # row-major flatten of (c, h*w) == PyTorch .view(N, -1) on NCHW features
    flat = h2.reshape(1, -1).astype(jnp.bfloat16)
    o_ref[...] = jnp.dot(flat, fcw_ref[...],
                         preferred_element_type=jnp.float32) + fcb_ref[...]


def _mlp_gate_kernel(x_ref, w1_ref, b1_ref, w2_ref, b2_ref, o_ref, acc_ref):
    # K-tiled fc1 reduction with VMEM accumulator; fc2 fused on the last step.
    # x_ref: (N, TK) bf16; w1_ref: (TK, 512) bf16; b1_ref: (1, 512) f32
    # w2_ref: (512, 4) bf16;  b2_ref: (1, 4) f32;  o_ref: (N, 4) f32
    k = pl.program_id(0)

    @pl.when(k == 0)
    def _():
        acc_ref[...] = jnp.zeros_like(acc_ref)

    acc_ref[...] += jnp.dot(x_ref[...], w1_ref[...],
                            preferred_element_type=jnp.float32)

    @pl.when(k == pl.num_programs(0) - 1)
    def _():
        h = jnp.maximum(acc_ref[...] + b1_ref[...], 0.0).astype(jnp.bfloat16)
        o_ref[...] = jnp.dot(h, w2_ref[...],
                             preferred_element_type=jnp.float32) + b2_ref[...]


def _affine_kernel(x_ref, s_ref, b_ref, o_ref):
    # Single streaming pass: out = x * scale + shift (scale/shift per row).
    # x_ref/o_ref: (TR, H*W) f32; s_ref/b_ref: (TR, 1) f32
    o_ref[...] = x_ref[...] * s_ref[...] + b_ref[...]


# ----------------------------- helpers ---------------------------------------

def _pick_row_tile(rows, lanes, budget_bytes=4 << 20):
    """Largest row tile that divides `rows`, is a multiple of 8 (or == rows),
    and keeps the f32 data tile under ~4 MiB."""
    if rows * lanes * 4 <= budget_bytes:
        return rows
    max_rows = max(8, budget_bytes // (lanes * 4))
    best = None
    for cand in range(8, rows + 1, 8):
        if rows % cand == 0 and cand <= max_rows:
            best = cand
    return best if best is not None else rows


def _pick_k_tile(nfeat, max_tile=512):
    """K tile for the MLP fc1 reduction: multiple of 128 dividing nfeat."""
    if nfeat <= max_tile:
        return nfeat
    for cand in range(max_tile, 127, -128):
        if nfeat % cand == 0:
            return cand
    return nfeat  # fallback: no K tiling possible


# ----------------------------- module ----------------------------------------

class WBnPallas:
    """Pallas/TPU implementation of W_bn.forward."""

    def __init__(self, channel, feature_shape, is_conv, key):
        self.channel = channel
        self.feature_shape = tuple(feature_shape)  # (C, H, W)
        self.is_conv = is_conv
        C = channel
        _, H, W = self.feature_shape
        keys = jax.random.split(key, 12)

        # 4 BatchNorm2d parameter sets; fold running stats into eval-form
        # scale/shift ONCE (constants), stored lane-dense as (4, C).
        gamma = 1.0 + 0.1 * jax.random.normal(keys[0], (4, C))
        beta = 0.1 * jax.random.normal(keys[1], (4, C))
        mean = 0.1 * jax.random.normal(keys[2], (4, C))
        var = 0.5 + jax.random.uniform(keys[3], (4, C))
        scale4 = gamma * jax.lax.rsqrt(var + EPS)
        self.scale4 = scale4.astype(jnp.float32)                    # (4, C)
        self.shift4 = (beta - mean * scale4).astype(jnp.float32)    # (4, C)

        if is_conv:
            # PyTorch OIHW conv weights -> (Cout, 9*Cin) matrices whose column
            # ordering (kh, kw, cin) matches the wrapper im2col row ordering.
            w1 = 0.2 * jax.random.normal(keys[4], (C, C, 3, 3))
            w2 = 0.2 * jax.random.normal(keys[5], (2 * C, C, 3, 3))
            self.w1_mat = jnp.transpose(w1, (0, 2, 3, 1)).reshape(
                C, 9 * C).astype(jnp.bfloat16)
            self.w2_mat = jnp.transpose(w2, (0, 2, 3, 1)).reshape(
                2 * C, 9 * C).astype(jnp.bfloat16)
            Ho = (H + 2 - 3) // 2 + 1
            Wo = (W + 2 - 3) // 2 + 1
            nfc = 2 * C * Ho * Wo
            fc_w = 0.1 * jax.random.normal(keys[6], (4, nfc))   # PyTorch (out, in)
            fc_b = 0.1 * jax.random.normal(keys[7], (4,))
            self.fc_wT = fc_w.T.astype(jnp.bfloat16)            # (nfc, 4)
            self.fc_b2d = fc_b.reshape(1, 4).astype(jnp.float32)
        else:
            nfeat = C * H * W
            fc1_w = 0.05 * jax.random.normal(keys[8], (512, nfeat))
            fc1_b = 0.05 * jax.random.normal(keys[9], (512,))
            fc2_w = 0.1 * jax.random.normal(keys[10], (4, 512))
            fc2_b = 0.1 * jax.random.normal(keys[11], (4,))
            self.fc1_wT = fc1_w.T.astype(jnp.bfloat16)           # (nfeat, 512)
            self.fc1_b2d = fc1_b.reshape(1, 512).astype(jnp.float32)
            self.fc2_wT = fc2_w.T.astype(jnp.bfloat16)           # (512, 4)
            self.fc2_b2d = fc2_b.reshape(1, 4).astype(jnp.float32)
            self.mlp_tk = _pick_k_tile(nfeat)

    # ------------------------- gate network ----------------------------------

    def _gate_logits_conv(self, x_nchw):
        N, C, H, W = x_nchw.shape
        Ho = (H + 2 - 3) // 2 + 1
        Wo = (W + 2 - 3) // 2 + 1
        HW, HoWo = H * W, Ho * Wo
        par = pltpu.CompilerParams(dimension_semantics=("parallel",))

        # im2col for conv1 (stride 1, pad 1), built in the wrapper so the
        # kernel does a single K=9*Cin matmul (no in-kernel window slicing).
        xpad = jnp.pad(x_nchw.astype(jnp.float32),
                       ((0, 0), (0, 0), (1, 1), (1, 1)))
        p1 = jnp.stack([xpad[:, :, kh:kh + H, kw:kw + W]
                        for kh in range(3) for kw in range(3)], axis=1)
        p1 = p1.reshape(N, 9 * C, HW).astype(jnp.bfloat16)

        h1 = pl.pallas_call(
            _conv_relu_kernel,
            out_shape=jax.ShapeDtypeStruct((N, C, HW), jnp.bfloat16),
            grid=(N,),
            in_specs=[
                pl.BlockSpec((None, 9 * C, HW), lambda n: (n, 0, 0)),
                pl.BlockSpec((C, 9 * C), lambda n: (0, 0)),
            ],
            out_specs=pl.BlockSpec((None, C, HW), lambda n: (n, 0, 0)),
            compiler_params=par,
        )(p1, self.w1_mat)

        # im2col for conv2 (stride 2, pad 1); conv2 matmul + fc head fused.
        h1_img = h1.reshape(N, C, H, W)
        h1p = jnp.pad(h1_img, ((0, 0), (0, 0), (1, 1), (1, 1)))
        p2 = jnp.stack([h1p[:, :, kh:kh + 2 * Ho:2, kw:kw + 2 * Wo:2]
                        for kh in range(3) for kw in range(3)], axis=1)
        p2 = p2.reshape(N, 9 * C, HoWo)  # bf16

        logits = pl.pallas_call(
            _conv2_fc_kernel,
            out_shape=jax.ShapeDtypeStruct((N, 1, 4), jnp.float32),
            grid=(N,),
            in_specs=[
                pl.BlockSpec((None, 9 * C, HoWo), lambda n: (n, 0, 0)),
                pl.BlockSpec((2 * C, 9 * C), lambda n: (0, 0)),
                pl.BlockSpec((2 * C * HoWo, 4), lambda n: (0, 0)),
                pl.BlockSpec((1, 4), lambda n: (0, 0)),
            ],
            out_specs=pl.BlockSpec((None, 1, 4), lambda n: (n, 0, 0)),
            compiler_params=par,
        )(p2, self.w2_mat, self.fc_wT, self.fc_b2d)
        return logits.reshape(N, 4)

    def _gate_logits_mlp(self, x_nchw):
        N = x_nchw.shape[0]
        x_flat = x_nchw.reshape(N, -1).astype(jnp.bfloat16)  # NCHW flatten == torch .view
        nfeat = x_flat.shape[1]
        TK = self.mlp_tk
        grid_k = nfeat // TK
        return pl.pallas_call(
            _mlp_gate_kernel,
            out_shape=jax.ShapeDtypeStruct((N, 4), jnp.float32),
            grid=(grid_k,),
            in_specs=[
                pl.BlockSpec((N, TK), lambda k: (0, k)),
                pl.BlockSpec((TK, 512), lambda k: (k, 0)),
                pl.BlockSpec((1, 512), lambda k: (0, 0)),
                pl.BlockSpec((512, 4), lambda k: (0, 0)),
                pl.BlockSpec((1, 4), lambda k: (0, 0)),
            ],
            out_specs=pl.BlockSpec((N, 4), lambda k: (0, 0)),
            scratch_shapes=[pltpu.VMEM((N, 512), jnp.float32)],
            compiler_params=pltpu.CompilerParams(
                dimension_semantics=("arbitrary",)),
        )(x_flat, self.fc1_wT, self.fc1_b2d, self.fc2_wT, self.fc2_b2d)

    # ------------------------- batchnorm application --------------------------

    def _apply_affine(self, x_nchw, scale_nc, shift_nc):
        # out[n,c,h,w] = x[n,c,h,w] * scale[n,c] + shift[n,c]  (one streaming pass)
        N, C, H, W = x_nchw.shape
        R, L = N * C, H * W
        x2d = x_nchw.reshape(R, L).astype(jnp.float32)
        s = scale_nc.reshape(R, 1).astype(jnp.float32)
        b = shift_nc.reshape(R, 1).astype(jnp.float32)
        TR = _pick_row_tile(R, L)
        out = pl.pallas_call(
            _affine_kernel,
            out_shape=jax.ShapeDtypeStruct((R, L), jnp.float32),
            grid=(R // TR,),
            in_specs=[
                pl.BlockSpec((TR, L), lambda r: (r, 0)),
                pl.BlockSpec((TR, 1), lambda r: (r, 0)),
                pl.BlockSpec((TR, 1), lambda r: (r, 0)),
            ],
            out_specs=pl.BlockSpec((TR, L), lambda r: (r, 0)),
            compiler_params=pltpu.CompilerParams(
                dimension_semantics=("parallel",)),
        )(x2d, s, b)
        return out.reshape(N, C, H, W)

    # ------------------------------ forward -----------------------------------

    def __call__(self, x, is_training, norm_type=None):
        logits = (self._gate_logits_conv(x) if self.is_conv
                  else self._gate_logits_mlp(x))
        N, C, _, _ = x.shape
        if is_training:
            # cross-entropy against a constant target class (tiny N x 4 -> wrapper)
            log_probs = jax.nn.log_softmax(logits, axis=-1)
            gate_loss = -jnp.mean(log_probs[:, norm_type])
            # TODO(synk): BatchNorm implemented with running statistics (eval affine
            # form); train-mode batch statistics / running-stat updates not modeled.
            scale_nc = jnp.broadcast_to(self.scale4[norm_type], (N, C))
            shift_nc = jnp.broadcast_to(self.shift4[norm_type], (N, C))
            bn_out = self._apply_affine(x, scale_nc, shift_nc)
            return bn_out, gate_loss
        else:
            # softmax + 4-way combine folded algebraically on tiny (N,4)/(4,C)
            # arrays in the wrapper:  sum_i w_i*(x*s_i+t_i) = x*(w@s) + (w@t)
            w = jax.nn.softmax(logits, axis=-1)          # (N, 4)
            scale_nc = w @ self.scale4                   # (N, C)
            shift_nc = w @ self.shift4                   # (N, C)
            return self._apply_affine(x, scale_nc, shift_nc)


# ------------------------------- demo -----------------------------------------

if __name__ == "__main__":
    key = jax.random.PRNGKey(0)
    k_param, k_param2, k_x = jax.random.split(key, 3)

    N, C, H, W = 2, 4, 16, 16
    x = jax.random.normal(k_x, (N, C, H, W), dtype=jnp.float32)

    # conv gate variant (is_conv=True)
    model_conv = WBnPallas(channel=C, feature_shape=(C, H, W), is_conv=True,
                           key=k_param)
    out_eval = model_conv(x, is_training=False)
    bn_out, gate_loss = model_conv(x, is_training=True, norm_type=2)

    # mlp gate variant (is_conv=False)
    model_mlp = WBnPallas(channel=C, feature_shape=(C, H, W), is_conv=False,
                          key=k_param2)
    out_eval_mlp = model_mlp(x, is_training=False)
    bn_out_mlp, gate_loss_mlp = model_mlp(x, is_training=True, norm_type=1)

    jax.block_until_ready((out_eval, bn_out, gate_loss,
                           out_eval_mlp, bn_out_mlp, gate_loss_mlp))
    assert out_eval.shape == (N, C, H, W)
    assert bn_out.shape == (N, C, H, W)
    assert out_eval_mlp.shape == (N, C, H, W)
    assert bn_out_mlp.shape == (N, C, H, W)
    assert gate_loss.shape == () and gate_loss_mlp.shape == ()
    print("KERNEL_OK")
</pallas_src>

<mosaic_0001>
module attributes {stable_mosaic.version = 11 : i64} {
  func.func @_conv_relu_kernel(%arg0: i32, %arg1: memref<1x36x256xbf16, #tpu.memory_space<vmem>>, %arg2: memref<4x36xbf16, #tpu.memory_space<vmem>>, %arg3: memref<1x4x256xbf16, #tpu.memory_space<vmem>>) attributes {dimension_semantics = [#tpu.dimension_semantics<parallel>], iteration_bounds = array<i64: 2>, scalar_prefetch = 0 : i64, scratch_operands = 0 : i64, tpu.core_type = #tpu.core_type<tc>, window_params = [{transform_indices = @transform_0, window_bounds = array<i64: 1, 36, 256>}, {pipeline_mode = #tpu.pipeline_mode<synchronous>, transform_indices = @transform_1, window_bounds = array<i64: 4, 36>}, {transform_indices = @transform_2, window_bounds = array<i64: 1, 4, 256>}]} {
    %c0 = arith.constant 0 : index
    %c0_0 = arith.constant 0 : index
    %0 = vector.load %arg2[%c0, %c0_0] : memref<4x36xbf16, #tpu.memory_space<vmem>>, vector<4x36xbf16>
    %c0_1 = arith.constant 0 : index
    %c0_2 = arith.constant 0 : index
    %c0_3 = arith.constant 0 : index
    %1 = vector.load %arg1[%c0_1, %c0_2, %c0_3] : memref<1x36x256xbf16, #tpu.memory_space<vmem>>, vector<1x36x256xbf16>
    %2 = vector.shape_cast %1 : vector<1x36x256xbf16> to vector<36x256xbf16>
    %cst = arith.constant dense<0.000000e+00> : vector<4x256xf32>
    %3 = tpu.matmul %0, %2, %cst {dimension_numbers = #tpu.dot_dimension_numbers<[1], [0], [0], [1], [0, 0, 1, 1], [], []>} : vector<4x36xbf16>, vector<36x256xbf16>, vector<4x256xf32> -> vector<4x256xf32>
    %cst_4 = arith.constant 0.000000e+00 : f32
    %4 = vector.broadcast %cst_4 : f32 to vector<4x256xf32>
    %5 = arith.maximumf %3, %4 : vector<4x256xf32>
    %6 = arith.truncf %5 : vector<4x256xf32> to vector<4x256xbf16>
    %c0_5 = arith.constant 0 : index
    %c0_6 = arith.constant 0 : index
    %c0_7 = arith.constant 0 : index
    %7 = vector.load %arg3[%c0_5, %c0_6, %c0_7] : memref<1x4x256xbf16, #tpu.memory_space<vmem>>, vector<1x4x256xbf16>
    %8 = vector.shape_cast %7 : vector<1x4x256xbf16> to vector<4x256xbf16>
    %9 = vector.shape_cast %6 : vector<4x256xbf16> to vector<1x4x256xbf16>
    tpu.vector_store %arg3[%c0_5, %c0_6, %c0_7], %9 {strides = array<i32>} : memref<1x4x256xbf16, #tpu.memory_space<vmem>>, vector<1x4x256xbf16>,
    return
  }
  func.func @transform_0(%arg0: i32) -> (i32, i32, i32) {
    %c0_i32 = arith.constant 0 : i32
    %c0_i32_0 = arith.constant 0 : i32
    %c0_i32_1 = arith.constant 0 : i32
    return %arg0, %c0_i32, %c0_i32_0 : i32, i32, i32
  }
  func.func @transform_1(%arg0: i32) -> (i32, i32) {
    %c0_i32 = arith.constant 0 : i32
    %c0_i32_0 = arith.constant 0 : i32
    %c0_i32_1 = arith.constant 0 : i32
    return %c0_i32, %c0_i32_0 : i32, i32
  }
  func.func @transform_2(%arg0: i32) -> (i32, i32, i32) {
    %c0_i32 = arith.constant 0 : i32
    %c0_i32_0 = arith.constant 0 : i32
    %c0_i32_1 = arith.constant 0 : i32
    return %arg0, %c0_i32, %c0_i32_0 : i32, i32, i32
  }
}

</mosaic_0001>

<bundles_post_ra>
// kernel: tpu_custom_call.1
= control target key start
LH: loop header
LB: loop body
LE: loop exit
PB: predicated region body
PF: predicated region fallthrough
CT: control target
= control target key end

     0   :  { %7 = vsyncpa [#allocation3], 0  ;;  %s571_s0 = inlined_call_operand.vmem [shape: bf16[2,36,256], index: 0, kind: input, shape index: {}]   ;;  %s572_s1 = inlined_call_operand.vmem [shape: bf16[4,36], index: 1, kind: input, shape index: {}]   ;;  %s573_s2 = inlined_call_operand.hbm [shape: bf16[2,4,256], index: 2, kind: output, shape index: {}]  }
   0x1   :  { %9 = vsyncpa [#allocation3 + $0x1], 0  ;;  %s468_s9 = smov 0   ;;  %s470_s10 = smov 0  }
   0x2   :  { %s472_s11 = smov 0   ;;  %s474_s12 = smov 0  }
   0x3 LB: > { %s489_s13 = sadd.s32 4294967295, %s449_s12   ;;  %s316_s14 = sadd.s32 4294967294, %s449_s12   ;;  %s449_s12 = sphi %s474_s12, %s579_s12   ;;  %s445_s11 = sphi %s472_s11, %s578_s11   ;;  %s441_s10 = sphi %s470_s10, %s577_s10   ;;  %s437_s9 = sphi %s468_s9, %s576_s9  }
   0x4   : > { %s493_s15 = sadd.s32 1, %s449_s12   ;;  %s69_s16 = sadd.s32 1, %s445_s11 }
   0x5   : > { %s66_s17 = ssub.s32 %s449_s12, %s493_s15  ;;  %p79_p0 = scmp.ne.s32.totalorder %s445_s11, %s441_s10 }
   0x6   : > { %p67_p1 = scmp.eq.s32.totalorder %s66_s17, 0  ;;  %p80_p2 = scmp.eq.s32.totalorder %s489_s13, 1 }
   0x7   : > { %p85_p3 = scmp.ne.s32.totalorder %s441_s10, %s437_s9  ;;  %p86_p4 = scmp.eq.s32.totalorder %s316_s14, 1 }
   0x8   : > { %s504_s18 = scalar_select %p67_p1, %s445_s11, %s69_s16  }
   0x9   : > { %p506_p5 = por %p80_p2, %p79_p0  ;;  %p510_p6 = por %p86_p4, %p85_p3 }
   0xa   : > { %p319_p7 = scmp.ge.s32.totalorder %s449_s12, 1  ;;  %p115_p8 = scmp.lt.s32.totalorder %s449_s12, 3 }
   0xc   : > { %p116_p9 = pnand %p319_p7, %p115_p8 }
   0xd   : > { %p137_p10 = scmp.lt.s32.totalorder (!%p116_p9), %s489_s13, 1  ;;  %v451_v0 = vmov (!%p116_p9), 0   ;;  %vm178_vm0 = vcmask (!%p116_p9), 1041408   ;;  %v143_v9 = vld [vmem:[%s572_s1] sm:$0x3] (!%p116_p9)  ;;  %vm174_vm1 = vcmask (!%p116_p9), 293888  }
   0xe   : > { %119 = sbr.rel (%p116_p9) target bundleno = 270 (0x10e), region = 28  ;;  %217 = vmatprep.mubr.bf16.mxu0 (!%p116_p9), %v451_v0  ;;  %s134_s28 = sand.u32 (!%p116_p9), 1, %s441_s10  }
   0xf   : > { %s320_s29 = sshll.u32 (!%p116_p9), %s134_s28, 2  ;;  %s337_s30 = sshll.u32 (!%p116_p9), %s489_s13, 6 }
  0x10   : > { %s136_s3 = scalar_lea.vmem (!%p116_p9), [#allocation2], %s320_s29  ;;  %s529_s7 = scalar_lea.hbm (!%p116_p9), %s573_s2, %s337_s30 }
  0x11   : > { %s257_s4 = sshll.u32 (!%p116_p9), %s136_s3, 4  ;;  %s243_s8 = scalar_lea.sflag (!%p116_p9), [#allocation3], %s134_s28  ;;  %s531_s4 = int_to_ptr.vmem [resolvable:$true] %s257_s4 }
  0x12   : > { %s387_s14 = scalar_lea.vmem (!%p116_p9), %s531_s4, 64 }
  0x13   : > { %p388_p11 = scmp.ne.s32.totalorder (!%p116_p9), %s531_s4, %s387_s14 }
  0x15   : > { %s138_s21 = scalar_select %p137_p10, %s489_s13, 1 }
  0x16   : > { %p389_p12 = pnand %p388_p11, %p506_p5  ;;  %s452_s13 = smov [#allocation2]  }
  0x17   : > { %s338_s22 = smul.u32 40, %s138_s21  ;;  %s391_s16 = sshll.u32 %s452_s13, 4  ;;  %s392_s16 = int_to_ptr.vmem [resolvable:$false] %s391_s16 }
  0x18   : > { %p390_p13 = pneg %p389_p12  ;;  %s393_s17 = scalar_lea.vmem %s392_s16, 128 }
  0x19   : > { %s141_s25 = scalar_lea.vmem %s571_s0, %s338_s22  ;;  %p394_p0 = scmp.lt.s32.totalorder %s531_s4, %s392_s16 }
  0x1a   : > { %v379_v1 = vld [vmem:[%s141_s25 + $0x4] ss:$8 sps:$4 sm:$0xff]   ;;  %v381_v2 = vld [vmem:[%s141_s25] ss:$8 sps:$4 sm:$0xff]   ;;  %v382_v3 = vld [vmem:[%s141_s25 + $0x14] ss:$8 sps:$4 sm:$0xff]   ;;  %p395_p1 = scmp.lt.s32.totalorder %s393_s17, %s387_s14 }
  0x1b   : > { %185 = vmatprep.subr.bf16.mxu0 %v379_v1  ;;  %v148_v4 = vld [vmem:[%s141_s25 + $0x20] sm:$0x33]  ;;  %v384_v5 = vld [vmem:[%s141_s25 + $0x10] ss:$8 sps:$4 sm:$0xff]  }
  0x1c   : > { %186 = vmatpush1.bf16.msra.mxu0 %v381_v2  ;;  %v327_v6 = vcombine.high %v148_v4, %v148_v4  ;;  %v326_v7 = vcombine.low %v148_v4, %v148_v4  ;;  %p396_p2 = por %p395_p1, %p394_p0 }
  0x1d   : > { %187 = vmatprep.subr.bf16.mxu0 %v382_v3 }
  0x1e   : > { %v180_v8 = vsel %vm178_vm0, %v326_v7, 0  ;;  %p397_p3 = pnand %p396_p2, %p390_p13 }
  0x20   : > { %188 = vmatpush1.bf16.msra.mxu0 %v384_v5 }
  0x21   : > { %328 = vmatprep.subr.msk.bf16.mxu0 %vm178_vm0, %v327_v6 }
  0x24   : > { %190 = vmatpush1.bf16.msra.mxu0 %v180_v8 }
  0x27   : > { %329 = vmatmul.mubr.msk.bf16.vlgmr.msra.gmra.mrb[0].mxu0 %vm174_vm1, %v143_v9 }
  0xfa   : > { %v219_v10 = vpop.f32.mrb[0].mxu0 }
  0xfb   : > { %v226_v11 = vmax.f32 %v219_v10, 0.0  ;;  %v221_v12 = vpop.f32.mrb[1].mxu0 }
  0xfc   : > { %v227_v13 = vmax.f32 %v221_v12, 0.0  ;;  %v223_v14 = vpop.f32.mrb[2].mxu0 }
  0xfd   : > { %v224_v15 = vpop.f32.mrb[3].mxu0 }
  0xfe   : > { %v330_v16 = vpack.c.bf16 %v227_v13, %v226_v11 }
 0x100   : > { %331 = vst.sshfl [vmem:[%s136_s3] sm:$0x33 pattern:$0x76325410] %v330_v16 }
 0x101   : > { %400 = shalt.err (!%p397_p3)
}
 0x102   : > { %s401_s21 = scalar_lea.hbm %s529_s7, 64  ;;  %s405_s24 = scalar_lea.hbm %s573_s2, 128 }
 0x103   : > { %p402_p4 = scmp.ne.s32.totalorder %s529_s7, %s401_s21  ;;  %p406_p9 = scmp.lt.u32.totalorder %s529_s7, %s573_s2 }
 0x104   : > { %p407_p10 = scmp.lt.u32.totalorder %s405_s24, %s401_s21  ;;  %p409_p12 = scmp.lt.u32.totalorder %s401_s21, %s529_s7 }
 0x105   : > { %p403_p7 = pnand %p402_p4, %p506_p5 }
 0x106   : > { %p408_p11 = por %p407_p10, %p406_p9 }
 0x107   : > { %p404_p8 = pneg %p403_p7 }
 0x108   : > { %p410_p13 = por %p409_p12, %p408_p11 }
 0x10a   : > { %p411_p0 = pnand %p410_p13, %p404_p8 }
 0x10c   : > { %414 = shalt.err (!%p411_p0)
}
 0x10d   : > { %339 = dma.vmem_to_hbm [thread:$0]  (%p506_p5), %s531_s4, 64, %s529_s7, %s243_s8  }
 0x10e PF: > { %p345_p1 = scmp.ge.s32.totalorder %s449_s12, 2  ;;  %s269_s27 = sand.u32 1, %s437_s9  }
 0x10f   : > { %s270_s28 = scalar_lea.sflag [#allocation3], %s269_s27 }
 0x110   : > { %p342_p2 = pnand %p345_p1, %p510_p6 }
 0x112   : > { %432 = dma.done.wait (!%p342_p2), %s270_s28, 64  }
 0x113   : > { %434 = vsyncadd (!%p342_p2), %s270_s28, 4294967232  ;;  %p12_p3 = scmp.ge.s32.totalorder %s493_s15, 4   ;;  %s576_s9 = smov %s441_s10 }
 0x114   : > { %s577_s10 = smov %s445_s11  ;;  %s578_s11 = smov %s504_s18 }
 0x115   : > { %s579_s12 = smov %s493_s15  ;;  %14 = sbr.rel (!%p12_p3) target bundleno = 3 (0x3), region = 63 }
 0x11c   :  { %275 = vsyncpa [#allocation3], 1 }
 0x11d   :  { %277 = vsyncpa [#allocation3 + $0x1], 1 }

</bundles_post_ra>
